<compile_context>
chip_gen: v5e
topology: v5e:2x2
jax: 0.10.0
libtpu: 0.0.40
codegen_flags: <defaults>
</compile_context>

<pallas_src>
import jax
import jax.numpy as jnp
from jax import lax
from jax.experimental import pallas as pl
from jax.experimental.pallas import tpu as pltpu


def _flash_attn_kernel(q_ref, k_ref, v_ref, out_ref, mx_sc, l_sc, acc_sc):
    """One (batch, q-tile) owns the scratch; kv tiles stream along grid axis 2."""
    kv = pl.program_id(2)
    nkv = pl.num_programs(2)

    @pl.when(kv == 0)
    def _init():
        mx_sc[...] = jnp.full(mx_sc.shape, -jnp.inf, jnp.float32)
        l_sc[...] = jnp.zeros(l_sc.shape, jnp.float32)
        acc_sc[...] = jnp.zeros(acc_sc.shape, jnp.float32)

    q = q_ref[0]                                                  # (TQ, C8) bf16
    k = k_ref[0]                                                  # (TK, C8) bf16
    v = v_ref[0]                                                  # (TK, C)  bf16

    # energy tile: (TQ, TK) = Q' @ K'^T, contracting over C/8 (shallow MXU pass)
    s = lax.dot_general(q, k, (((1,), (1,)), ((), ())),
                        preferred_element_type=jnp.float32)

    # online softmax, kept unnormalized until the final kv step
    m_new = jnp.maximum(mx_sc[...], jnp.max(s, axis=-1, keepdims=True))
    alpha = jnp.exp(mx_sc[...] - m_new)                           # rescale old stats
    p = jnp.exp(s - m_new)                                        # (TQ, TK) f32
    l_sc[...] = alpha * l_sc[...] + jnp.sum(p, axis=-1, keepdims=True)
    acc_sc[...] = alpha * acc_sc[...] + jnp.dot(
        p.astype(jnp.bfloat16), v, preferred_element_type=jnp.float32)
    mx_sc[...] = m_new

    # ---- finalize (last kv): deferred normalization, bf16 output ------------
    @pl.when(kv == nkv - 1)
    def _done():
        # exact reciprocal: runs once per q-tile, essentially free
        out_ref[0] = (acc_sc[...] *
                      pl.reciprocal(l_sc[...], approx=False)).astype(out_ref.dtype)


def _pick_tile(n, target):
    """Largest divisor of n that is <= target and a multiple of 128 (preferred)
    or 16 (bf16 sublane packing); falls back to the full extent n (always a
    legal block size)."""
    target = min(n, target)
    for mult in (128, 16):
        start = target - (target % mult)
        for t in range(start, 0, -mult):
            if t > 0 and n % t == 0:
                return t
    # TODO(synk): ragged last-tile masking for awkward N instead of full-extent.
    return n


def self_attention_pallas(x_nchw, wq, bq, wk, bk, wv, bv,
                          *, q_tile=512, k_tile=512):
    """x_nchw: (B, C, W, H) float32.  Conv weights in PyTorch layout:
       wq/wk: (C//8, C, 1, 1), wv: (C, C, 1, 1), biases 1-D.
       Returns (out, attn) in NCHW, matching the PyTorch module.
       NOTE: bk is accepted but unused by design — softmax row-shift invariance
       makes the key bias a no-op."""
    B, C, W, H = x_nchw.shape
    N = W * H
    C8 = C // 8

    # Channels-last layout for the projections.
    x_flat = jnp.transpose(x_nchw.reshape(B, C, N), (0, 2, 1))      # (B, N, C) f32

    wq_t = wq.reshape(C8, C).T                                      # (C, C8)
    wk_t = wk.reshape(C8, C).T                                      # (C, C8)
    wv_t = wv.reshape(C, C).T                                       # (C, C)

    # Projections done once as efficient XLA matmuls (the 1x1 convs).
    q_proj = (x_flat @ wq_t + bq.reshape(1, 1, C8)).astype(jnp.bfloat16)  # (B,N,C8)
    k_proj = (x_flat @ wk_t).astype(jnp.bfloat16)                         # (B,N,C8)
    v_proj = (x_flat @ wv_t + bv.reshape(1, 1, C)).astype(jnp.bfloat16)   # (B,N,C)

    tq = _pick_tile(N, q_tile)
    tk = _pick_tile(N, k_tile)
    grid = (B, N // tq, N // tk)

    attn_flat = pl.pallas_call(
        _flash_attn_kernel,
        out_shape=jax.ShapeDtypeStruct((B, N, C), jnp.bfloat16),
        grid_spec=pltpu.PrefetchScalarGridSpec(
            num_scalar_prefetch=0,
            grid=grid,
            in_specs=[
                pl.BlockSpec((1, tq, C8), lambda b, qi, kv: (b, qi, 0)),  # Q'
                pl.BlockSpec((1, tk, C8), lambda b, qi, kv: (b, kv, 0)),  # K'
                pl.BlockSpec((1, tk, C), lambda b, qi, kv: (b, kv, 0)),   # V
            ],
            out_specs=pl.BlockSpec((1, tq, C), lambda b, qi, kv: (b, qi, 0)),
            scratch_shapes=[
                pltpu.VMEM((tq, 1), jnp.float32),    # running max
                pltpu.VMEM((tq, 1), jnp.float32),    # running sum
                pltpu.VMEM((tq, C), jnp.float32),    # output accumulator
            ]),
        compiler_params=pltpu.CompilerParams(
            dimension_semantics=("parallel", "parallel", "arbitrary"),
            vmem_limit_bytes=48 * 1024 * 1024),
    )(q_proj, k_proj, v_proj)

    # Back to NCHW in f32; residual add in the wrapper (attn == out - x).
    attn_nchw = jnp.transpose(attn_flat.astype(jnp.float32),
                              (0, 2, 1)).reshape(B, C, W, H)
    out_nchw = attn_nchw + x_nchw
    return out_nchw, attn_nchw


def _reference(x_nchw, wq, bq, wk, bk, wv, bv):
    """Pure-JAX fp32 mirror of the PyTorch forward, for verification."""
    B, C, W, H = x_nchw.shape
    N = W * H
    C8 = C // 8

    def conv1x1(x, w, b):  # x: (B,C,W,H), w: (O,C,1,1)
        return jnp.einsum('bcwh,oc->bowh', x,
                          w.reshape(w.shape[0], C)) + b[None, :, None, None]

    q = conv1x1(x_nchw, wq, bq).reshape(B, C8, N).transpose(0, 2, 1)   # (B,N,C8)
    k = conv1x1(x_nchw, wk, bk).reshape(B, C8, N)                      # (B,C8,N)
    energy = jnp.einsum('bnc,bcm->bnm', q, k)
    attention = jax.nn.softmax(energy, axis=-1)
    v = conv1x1(x_nchw, wv, bv).reshape(B, C, N)                       # (B,C,N)
    out = jnp.einsum('bcn,bmn->bcm', v, attention).reshape(B, C, W, H)
    attn = out
    return out + x_nchw, attn


if __name__ == "__main__":
    B, C, W, H = 2, 64, 8, 8          # in_dim=64 so C//8=8; N = 64
    key = jax.random.PRNGKey(0)
    kx, kq, kbq, kk, kbk, kv_, kbv = jax.random.split(key, 7)

    x = jax.random.normal(kx, (B, C, W, H), dtype=jnp.float32)
    C8 = C // 8
    wq = jax.random.normal(kq,  (C8, C, 1, 1), dtype=jnp.float32) * 0.1
    bq = jax.random.normal(kbq, (C8,),          dtype=jnp.float32) * 0.1
    wk = jax.random.normal(kk,  (C8, C, 1, 1), dtype=jnp.float32) * 0.1
    bk = jax.random.normal(kbk, (C8,),          dtype=jnp.float32) * 0.1
    wv = jax.random.normal(kv_, (C, C, 1, 1),  dtype=jnp.float32) * 0.1
    bv = jax.random.normal(kbv, (C,),           dtype=jnp.float32) * 0.1

    out, attn = self_attention_pallas(x, wq, bq, wk, bk, wv, bv)
    out = jax.block_until_ready(out)
    attn = jax.block_until_ready(attn)

    ref_out, ref_attn = _reference(x, wq, bq, wk, bk, wv, bv)
    # bf16 Q'/K'/V operands + bf16 output -> loosened tolerance vs fp32 ref.
    assert jnp.allclose(out, ref_out, atol=5e-2, rtol=5e-2), "out mismatch"
    assert jnp.allclose(attn, ref_attn, atol=5e-2, rtol=5e-2), "attn mismatch"

    print("KERNEL_OK")
</pallas_src>

<mosaic_0001>
module attributes {stable_mosaic.version = 11 : i64} {
  func.func @_flash_attn_kernel(%arg0: i32, %arg1: i32, %arg2: i32, %arg3: memref<1x64x8xbf16, #tpu.memory_space<vmem>>, %arg4: memref<1x64x8xbf16, #tpu.memory_space<vmem>>, %arg5: memref<1x64x64xbf16, #tpu.memory_space<vmem>>, %arg6: memref<1x64x64xbf16, #tpu.memory_space<vmem>>, %arg7: memref<64x1xf32, #tpu.memory_space<vmem>>, %arg8: memref<64x1xf32, #tpu.memory_space<vmem>>, %arg9: memref<64x64xf32, #tpu.memory_space<vmem>>) attributes {dimension_semantics = [#tpu.dimension_semantics<parallel>, #tpu.dimension_semantics<parallel>, #tpu.dimension_semantics<arbitrary>], iteration_bounds = array<i64: 2, 1, 1>, scalar_prefetch = 0 : i64, scratch_operands = 3 : i64, tpu.core_type = #tpu.core_type<tc>, window_params = [{transform_indices = @transform_0, window_bounds = array<i64: 1, 64, 8>}, {transform_indices = @transform_1, window_bounds = array<i64: 1, 64, 8>}, {transform_indices = @transform_2, window_bounds = array<i64: 1, 64, 64>}, {transform_indices = @transform_3, window_bounds = array<i64: 1, 64, 64>}]} {
    %c0_i32 = arith.constant 0 : i32
    %0 = arith.cmpi eq, %arg2, %c0_i32 : i32
    %1 = arith.extui %0 : i1 to i32
    %c0_i32_0 = arith.constant 0 : i32
    %2 = arith.cmpi ne, %1, %c0_i32_0 : i32
    scf.if %2 {
      %cst_28 = arith.constant 0xFF800000 : f32
      %37 = vector.broadcast %cst_28 : f32 to vector<64x1xf32>
      %c0_29 = arith.constant 0 : index
      %c0_30 = arith.constant 0 : index
      %38 = vector.load %arg7[%c0_29, %c0_30] : memref<64x1xf32, #tpu.memory_space<vmem>>, vector<64x1xf32>
      tpu.vector_store %arg7[%c0_29, %c0_30], %37 {strides = array<i32>} : memref<64x1xf32, #tpu.memory_space<vmem>>, vector<64x1xf32>,
      %cst_31 = arith.constant 0.000000e+00 : f32
      %39 = vector.broadcast %cst_31 : f32 to vector<64x1xf32>
      %c0_32 = arith.constant 0 : index
      %c0_33 = arith.constant 0 : index
      %40 = vector.load %arg8[%c0_32, %c0_33] : memref<64x1xf32, #tpu.memory_space<vmem>>, vector<64x1xf32>
      tpu.vector_store %arg8[%c0_32, %c0_33], %39 {strides = array<i32>} : memref<64x1xf32, #tpu.memory_space<vmem>>, vector<64x1xf32>,
      %cst_34 = arith.constant 0.000000e+00 : f32
      %41 = vector.broadcast %cst_34 : f32 to vector<64x64xf32>
      %c0_35 = arith.constant 0 : index
      %c0_36 = arith.constant 0 : index
      %42 = vector.load %arg9[%c0_35, %c0_36] : memref<64x64xf32, #tpu.memory_space<vmem>>, vector<64x64xf32>
      tpu.vector_store %arg9[%c0_35, %c0_36], %41 {strides = array<i32>} : memref<64x64xf32, #tpu.memory_space<vmem>>, vector<64x64xf32>,
    } else {
    }
    %c0 = arith.constant 0 : index
    %c0_1 = arith.constant 0 : index
    %c0_2 = arith.constant 0 : index
    %3 = vector.load %arg3[%c0, %c0_1, %c0_2] : memref<1x64x8xbf16, #tpu.memory_space<vmem>>, vector<1x64x8xbf16>
    %4 = vector.shape_cast %3 : vector<1x64x8xbf16> to vector<64x8xbf16>
    %c0_3 = arith.constant 0 : index
    %c0_4 = arith.constant 0 : index
    %c0_5 = arith.constant 0 : index
    %5 = vector.load %arg4[%c0_3, %c0_4, %c0_5] : memref<1x64x8xbf16, #tpu.memory_space<vmem>>, vector<1x64x8xbf16>
    %6 = vector.shape_cast %5 : vector<1x64x8xbf16> to vector<64x8xbf16>
    %c0_6 = arith.constant 0 : index
    %c0_7 = arith.constant 0 : index
    %c0_8 = arith.constant 0 : index
    %7 = vector.load %arg5[%c0_6, %c0_7, %c0_8] : memref<1x64x64xbf16, #tpu.memory_space<vmem>>, vector<1x64x64xbf16>
    %8 = vector.shape_cast %7 : vector<1x64x64xbf16> to vector<64x64xbf16>
    %cst = arith.constant dense<0.000000e+00> : vector<64x64xf32>
    %9 = tpu.matmul %4, %6, %cst {dimension_numbers = #tpu.dot_dimension_numbers<[1], [1], [0], [0], [0, 0, 1, 0], [], []>} : vector<64x8xbf16>, vector<64x8xbf16>, vector<64x64xf32> -> vector<64x64xf32>
    %c0_9 = arith.constant 0 : index
    %c0_10 = arith.constant 0 : index
    %10 = vector.load %arg7[%c0_9, %c0_10] : memref<64x1xf32, #tpu.memory_space<vmem>>, vector<64x1xf32>
    %cst_11 = arith.constant dense<0xFF800000> : vector<64xf32>
    %11 = vector.multi_reduction <maximumf>, %9, %cst_11 [1] : vector<64x64xf32> to vector<64xf32>
    %12 = vector.shape_cast %11 : vector<64xf32> to vector<64x1xf32>
    %13 = arith.maximumf %10, %12 : vector<64x1xf32>
    %c0_12 = arith.constant 0 : index
    %c0_13 = arith.constant 0 : index
    %14 = vector.load %arg7[%c0_12, %c0_13] : memref<64x1xf32, #tpu.memory_space<vmem>>, vector<64x1xf32>
    %15 = arith.subf %14, %13 : vector<64x1xf32>
    %16 = math.exp %15 : vector<64x1xf32>
    %17 = vector.broadcast %13 : vector<64x1xf32> to vector<64x64xf32>
    %18 = arith.subf %9, %17 : vector<64x64xf32>
    %19 = math.exp %18 : vector<64x64xf32>
    %c0_14 = arith.constant 0 : index
    %c0_15 = arith.constant 0 : index
    %20 = vector.load %arg8[%c0_14, %c0_15] : memref<64x1xf32, #tpu.memory_space<vmem>>, vector<64x1xf32>
    %21 = arith.mulf %16, %20 : vector<64x1xf32>
    %cst_16 = arith.constant dense<0.000000e+00> : vector<64xf32>
    %22 = vector.multi_reduction <add>, %19, %cst_16 [1] : vector<64x64xf32> to vector<64xf32>
    %23 = vector.shape_cast %22 : vector<64xf32> to vector<64x1xf32>
    %24 = arith.addf %21, %23 : vector<64x1xf32>
    %c0_17 = arith.constant 0 : index
    %c0_18 = arith.constant 0 : index
    %25 = vector.load %arg8[%c0_17, %c0_18] : memref<64x1xf32, #tpu.memory_space<vmem>>, vector<64x1xf32>
    tpu.vector_store %arg8[%c0_17, %c0_18], %24 {strides = array<i32>} : memref<64x1xf32, #tpu.memory_space<vmem>>, vector<64x1xf32>,
    %c0_19 = arith.constant 0 : index
    %c0_20 = arith.constant 0 : index
    %26 = vector.load %arg9[%c0_19, %c0_20] : memref<64x64xf32, #tpu.memory_space<vmem>>, vector<64x64xf32>
    %27 = vector.broadcast %16 : vector<64x1xf32> to vector<64x64xf32>
    %28 = arith.mulf %27, %26 : vector<64x64xf32>
    %29 = arith.truncf %19 : vector<64x64xf32> to vector<64x64xbf16>
    %cst_21 = arith.constant dense<0.000000e+00> : vector<64x64xf32>
    %30 = tpu.matmul %29, %8, %cst_21 {dimension_numbers = #tpu.dot_dimension_numbers<[1], [0], [0], [1], [0, 0, 1, 1], [], []>} : vector<64x64xbf16>, vector<64x64xbf16>, vector<64x64xf32> -> vector<64x64xf32>
    %31 = arith.addf %28, %30 : vector<64x64xf32>
    %c0_22 = arith.constant 0 : index
    %c0_23 = arith.constant 0 : index
    %32 = vector.load %arg9[%c0_22, %c0_23] : memref<64x64xf32, #tpu.memory_space<vmem>>, vector<64x64xf32>
    tpu.vector_store %arg9[%c0_22, %c0_23], %31 {strides = array<i32>} : memref<64x64xf32, #tpu.memory_space<vmem>>, vector<64x64xf32>,
    %c0_24 = arith.constant 0 : index
    %c0_25 = arith.constant 0 : index
    %33 = vector.load %arg7[%c0_24, %c0_25] : memref<64x1xf32, #tpu.memory_space<vmem>>, vector<64x1xf32>
    tpu.vector_store %arg7[%c0_24, %c0_25], %13 {strides = array<i32>} : memref<64x1xf32, #tpu.memory_space<vmem>>, vector<64x1xf32>,
    %c0_i32_26 = arith.constant 0 : i32
    %34 = arith.cmpi eq, %arg2, %c0_i32_26 : i32
    %35 = arith.extui %34 : i1 to i32
    %c0_i32_27 = arith.constant 0 : i32
    %36 = arith.cmpi ne, %35, %c0_i32_27 : i32
    scf.if %36 {
      %c0_28 = arith.constant 0 : index
      %c0_29 = arith.constant 0 : index
      %37 = vector.load %arg9[%c0_28, %c0_29] : memref<64x64xf32, #tpu.memory_space<vmem>>, vector<64x64xf32>
      %c0_30 = arith.constant 0 : index
      %c0_31 = arith.constant 0 : index
      %38 = vector.load %arg8[%c0_30, %c0_31] : memref<64x1xf32, #tpu.memory_space<vmem>>, vector<64x1xf32>
      %39 = tpu.reciprocal %38 : vector<64x1xf32> -> vector<64x1xf32>
      %40 = vector.broadcast %39 : vector<64x1xf32> to vector<64x64xf32>
      %41 = arith.mulf %37, %40 : vector<64x64xf32>
      %42 = arith.truncf %41 : vector<64x64xf32> to vector<64x64xbf16>
      %c0_32 = arith.constant 0 : index
      %c0_33 = arith.constant 0 : index
      %c0_34 = arith.constant 0 : index
      %43 = vector.load %arg6[%c0_32, %c0_33, %c0_34] : memref<1x64x64xbf16, #tpu.memory_space<vmem>>, vector<1x64x64xbf16>
      %44 = vector.shape_cast %43 : vector<1x64x64xbf16> to vector<64x64xbf16>
      %45 = vector.shape_cast %42 : vector<64x64xbf16> to vector<1x64x64xbf16>
      tpu.vector_store %arg6[%c0_32, %c0_33, %c0_34], %45 {strides = array<i32>} : memref<1x64x64xbf16, #tpu.memory_space<vmem>>, vector<1x64x64xbf16>,
    } else {
    }
    return
  }
  func.func @transform_0(%arg0: i32, %arg1: i32, %arg2: i32) -> (i32, i32, i32) {
    %c0_i32 = arith.constant 0 : i32
    %c0_i32_0 = arith.constant 0 : i32
    return %arg0, %arg1, %c0_i32 : i32, i32, i32
  }
  func.func @transform_1(%arg0: i32, %arg1: i32, %arg2: i32) -> (i32, i32, i32) {
    %c0_i32 = arith.constant 0 : i32
    %c0_i32_0 = arith.constant 0 : i32
    return %arg0, %arg2, %c0_i32 : i32, i32, i32
  }
  func.func @transform_2(%arg0: i32, %arg1: i32, %arg2: i32) -> (i32, i32, i32) {
    %c0_i32 = arith.constant 0 : i32
    %c0_i32_0 = arith.constant 0 : i32
    return %arg0, %arg2, %c0_i32 : i32, i32, i32
  }
  func.func @transform_3(%arg0: i32, %arg1: i32, %arg2: i32) -> (i32, i32, i32) {
    %c0_i32 = arith.constant 0 : i32
    %c0_i32_0 = arith.constant 0 : i32
    return %arg0, %arg1, %c0_i32 : i32, i32, i32
  }
}

</mosaic_0001>

<bundles_post_ra>
// kernel: tpu_custom_call.1
= control target key start
LH: loop header
LB: loop body
LE: loop exit
PB: predicated region body
PF: predicated region fallthrough
CT: control target
= control target key end

     0   :  { %8 = vsyncpa [#allocation6], 0  ;;  %s1798_s0 = inlined_call_operand.vmem [shape: bf16[2,64,8], index: 0, kind: input, shape index: {}]   ;;  %s1799_s1 = inlined_call_operand.vmem [shape: bf16[2,64,8], index: 1, kind: input, shape index: {}]   ;;  %s1800_s2 = inlined_call_operand.vmem [shape: bf16[2,64,64], index: 2, kind: input, shape index: {}]   ;;  %s1801_s3 = inlined_call_operand.hbm [shape: bf16[2,64,64], index: 3, kind: output, shape index: {}]  }
   0x1   :  { %10 = vsyncpa [#allocation6 + $0x1], 0  ;;  %s1408_s12 = smov 0   ;;  %s1410_s13 = smov 0  }
   0x2   :  { %s1412_s14 = smov 0   ;;  %s1414_s15 = smov 0  }
   0x3   :  { %s1416_s16 = smov 0   ;;  %s1418_s17 = smov 0  }
   0x4 LB: > { %s1095_s18 = sadd.s32 4294967295, %s1381_s17   ;;  %s1096_s19 = sadd.s32 4294967294, %s1381_s17   ;;  %s1381_s17 = sphi %s1418_s17, %s16_s17   ;;  %s1377_s16 = sphi %s1416_s16, %s1810_s16   ;;  %s1373_s15 = sphi %s1414_s15, %s1809_s15   ;;  %s1369_s14 = sphi %s1412_s14, %s1808_s14   ;;  %s1365_s13 = sphi %s1410_s13, %s1807_s13   ;;  %s1361_s12 = sphi %s1408_s12, %s1806_s12  }
   0x5   : > { %s35_s20 = sadd.s32 1, %s1377_s16  ;;  %s128_s21 = sadd.s32 1, %s1369_s14 }
   0x6   : > { %p37_p0 = scmp.ge.s32.totalorder %s35_s20, 2  ;;  %p138_p1 = scmp.ne.s32.totalorder %s1369_s14, %s1365_s13 }
   0x7   : > { %p139_p2 = scmp.eq.s32.totalorder %s1095_s18, 1  ;;  %p144_p3 = scmp.ne.s32.totalorder %s1365_s13, %s1361_s12 }
   0x8   : > { %s1812_s20 = smov (%p37_p0, %s35_s20), 0  ;;  %p145_p5 = scmp.eq.s32.totalorder %s1096_s19, 1 }
   0x9   : > { %p1448_p4 = por %p139_p2, %p138_p1  ;;  %s123_s23 = ssub.s32 %s1377_s16, %s1812_s20 }
   0xa   : > { %p1099_p6 = scmp.ge.s32.totalorder %s1381_s17, 1  ;;  %p126_p7 = scmp.eq.s32.totalorder %s123_s23, 0 }
   0xb   : > { %p1455_p8 = por %p145_p5, %p144_p3  ;;  %p202_p9 = scmp.lt.s32.totalorder %s1381_s17, 3 }
   0xc   : > { %s1461_s25 = scalar_select %p126_p7, %s1369_s14, %s128_s21  }
   0xd   : > { %p203_p10 = pnand %p1099_p6, %p202_p9 }
   0xe   : > { %p249_p11 = scmp.lt.s32.totalorder (!%p203_p10), %s1373_s15, 1  ;;  %s245_s10 = sand.u32 (!%p203_p10), 1, %s1365_s13  }
   0xf   : > { %206 = sbr.rel (%p203_p10) target bundleno = 741 (0x2e5), region = 32  ;;  %s1100_s11 = sshll.u32 (!%p203_p10), %s245_s10, 5 }
  0x10   : > { %s1741_s18 = scalar_lea.vmem (!%p203_p10), [#allocation5], %s1100_s11  ;;  %s1183_s19 = sshll.u32 (!%p203_p10), %s1373_s15, 5 }
  0x14   : > { %s250_s26 = scalar_select %p249_p11, %s1373_s15, 1  ;;  %vm374_vm0 = vcmask 64512   ;;  %vm301_vm1 = vcmask 523264   ;;  %vm284_vm2 = vcmask 7168   ;;  %v1383_v14 = vmov -inf  }
  0x15   : > { %289 = vst.msk [vmem:[#allocation2 + $0x20] sm:$0xff] %vm284_vm2, %v1383_v14  ;;  %v1384_v29 = vmov 0   ;;  %v1385_v30 = vmov 0.0   ;;  %s960_s15 = scalar_lea.sflag [#allocation6], %s245_s10 }
  0x16   : > { %s1465_s27 = sshll.u32 %s250_s26, 5  ;;  %285 = vst.msk [vmem:[#allocation2] sm:$0xff] %vm284_vm2, %v1383_v14  ;;  %1254 = vset.pattern.permute.xlu1 %v1384_v29  ;;  %1252 = vset.pattern.permute.xlu2 %v1384_v29  ;;  %s973_s26 = scalar_lea.hbm %s1801_s3, %s1183_s19 }
  0x17   : > { %s266_s30 = scalar_lea.vmem %s1799_s1, %s1465_s27  ;;  %s256_s6 = scalar_lea.vmem %s1798_s0, %s1465_s27  ;;  %286 = vst.msk [vmem:[#allocation2 + $0x8] sm:$0xff] %vm284_vm2, %v1383_v14  ;;  %1253 = vset.pattern.permute.xlu0 %v1384_v29 }
  0x18   : > { %v1178_v0 = vld [vmem:[%s266_s30 + $0x18] sm:$0xff]  ;;  %v1177_v2 = vld [vmem:[%s266_s30 + $0x10] sm:$0xff]  ;;  %v1176_v4 = vld [vmem:[%s266_s30 + $0x8] sm:$0xff]  ;;  %287 = vst.msk [vmem:[#allocation2 + $0x10] sm:$0xff] %vm284_vm2, %v1383_v14  ;;  %s276_s9 = scalar_lea.vmem %s1800_s2, %s1465_s27  ;;  %s974_s27 = sshll.u32 %s1741_s18, 4  ;;  %s975_s27 = int_to_ptr.vmem [resolvable:$true] %s974_s27 }
  0x19   : > { %v397_v1 = vsel %vm374_vm0, %v1178_v0, 0  ;;  %v394_v3 = vsel %vm374_vm0, %v1177_v2, 0  ;;  %v391_v5 = vsel %vm374_vm0, %v1176_v4, 0  ;;  %v1175_v6 = vld [vmem:[%s266_s30] sm:$0xff]  ;;  %v1173_v9 = vld [vmem:[%s256_s6 + $0x10] sm:$0xff]  ;;  %v1172_v10 = vld [vmem:[%s256_s6 + $0x8] sm:$0xff] }
  0x1a   : > { %403 = vmatpush.bf16.xpose.msra.mxu0 %v397_v1  ;;  %1184 = vmatpush.bf16.xpose.msra.mxu2 %v397_v1  ;;  %v388_v7 = vsel %vm374_vm0, %v1175_v6, 0  ;;  %v1171_v8 = vld [vmem:[%s256_s6] sm:$0xff]  ;;  %v1174_v11 = vld [vmem:[%s256_s6 + $0x18] sm:$0xff]  ;;  %288 = vst.msk [vmem:[#allocation2 + $0x18] sm:$0xff] %vm284_vm2, %v1383_v14  ;;  %v1180_v4 = vld [vmem:[%s276_s9 + $0x8] sm:$0xff]  ;;  %s976_s28 = sshll.u32 %s973_s26, 4  ;;  %s977_s28 = int_to_ptr.hbm [resolvable:$true] %s976_s28 }
  0x1b   : > { %290 = vst.msk [vmem:[#allocation2 + $0x28] sm:$0xff] %vm284_vm2, %v1383_v14  ;;  %v1182_v1 = vld [vmem:[%s276_s9 + $0x18] sm:$0xff]  ;;  %s1317_s29 = sshra.s32 %s977_s28, 4  ;;  %s1323_s6 = scalar_lea.hbm %s1801_s3, 64  ;;  %s1318_s29 = int_to_ptr.hbm [resolvable:$true] %s1317_s29 }
  0x1c   : > { %291 = vst.msk [vmem:[#allocation2 + $0x30] sm:$0xff] %vm284_vm2, %v1383_v14  ;;  %v1540_v34 = vld [vmem:[#allocation2 + $0x20] sm:$0xff]  ;;  %1188 = vmatpush.bf16.msra.mxu3 %v1182_v1  ;;  %714 = vmatpush.bf16.msra.mxu1 %v1182_v1  ;;  %s1319_s30 = scalar_lea.hbm %s1318_s29, 32  ;;  %p1324_p1 = scmp.lt.s32.totalorder %s1318_s29, %s1801_s3 }
  0x1d   : > { %292 = vst.msk [vmem:[#allocation2 + $0x38] sm:$0xff] %vm284_vm2, %v1383_v14  ;;  %v428_v31 = vld [vmem:[#allocation2] sm:$0xff]  ;;  %p1320_p12 = scmp.ne.s32.totalorder %s1318_s29, %s1319_s30  ;;  %p1325_p2 = scmp.lt.s32.totalorder %s1323_s6, %s1319_s30 }
  0x1e   : > { %302 = vst.msk [vmem:[#allocation4] sm:$0xff] %vm301_vm1, %v1385_v30  ;;  %v1550_v38 = vld [vmem:[#allocation2 + $0x8] sm:$0xff] }
  0x1f   : > { %293 = vst.msk [vmem:[#allocation3] sm:$0xff] %vm284_vm2, %v1385_v30  ;;  %v1552_v40 = vld [vmem:[#allocation2 + $0x10] sm:$0xff]  ;;  %p1321_p13 = pnand %p1320_p12, %p1448_p4  ;;  %p1326_p3 = por %p1325_p2, %p1324_p1 }
  0x20   : > { %294 = vst.msk [vmem:[#allocation3 + $0x8] sm:$0xff] %vm284_vm2, %v1385_v30 }
  0x21   : > { %295 = vst.msk [vmem:[#allocation3 + $0x10] sm:$0xff] %vm284_vm2, %v1385_v30  ;;  %v1573_v50 = vld [vmem:[#allocation2 + $0x18] sm:$0xff]  ;;  %p1322_p0 = pneg %p1321_p13 }
  0x22   : > { %404 = vmatpush.bf16.xpose.msra.mxu0 %v394_v3  ;;  %1185 = vmatpush.bf16.xpose.msra.mxu2 %v394_v3  ;;  %296 = vst.msk [vmem:[#allocation3 + $0x18] sm:$0xff] %vm284_vm2, %v1385_v30  ;;  %v1571_v47 = vld [vmem:[#allocation2 + $0x28] sm:$0xff]  ;;  %v1181_v3 = vld [vmem:[%s276_s9 + $0x10] sm:$0xff] }
  0x23   : > { %297 = vst.msk [vmem:[#allocation3 + $0x20] sm:$0xff] %vm284_vm2, %v1385_v30  ;;  %v1569_v46 = vld [vmem:[#allocation2 + $0x30] sm:$0xff]  ;;  %1189 = vmatpush.bf16.msra.mxu3 %v1181_v3  ;;  %715 = vmatpush.bf16.msra.mxu1 %v1181_v3  ;;  %p1327_p5 = pnand %p1326_p3, %p1322_p0 }
  0x24   : > { %298 = vst.msk [vmem:[#allocation3 + $0x28] sm:$0xff] %vm284_vm2, %v1385_v30  ;;  %v1598_v58 = vld [vmem:[#allocation2 + $0x38] sm:$0xff] }
  0x25   : > { %299 = vst.msk [vmem:[#allocation3 + $0x30] sm:$0xff] %vm284_vm2, %v1385_v30 }
  0x26   : > { %300 = vst.msk [vmem:[#allocation3 + $0x38] sm:$0xff] %vm284_vm2, %v1385_v30 }
  0x27   : > { %303 = vst.msk [vmem:[#allocation4 + $0x8] sm:$0xff] %vm301_vm1, %v1385_v30  ;;  %1190 = vmatpush.bf16.msra.mxu3 %v1180_v4  ;;  %716 = vmatpush.bf16.msra.mxu1 %v1180_v4 }
  0x28   : > { %304 = vst.msk [vmem:[#allocation4 + $0x10] sm:$0xff] %vm301_vm1, %v1385_v30 }
  0x29   : > { %305 = vst.msk [vmem:[#allocation4 + $0x18] sm:$0xff] %vm301_vm1, %v1385_v30 }
  0x2a   : > { %405 = vmatpush.bf16.xpose.msra.mxu0 %v391_v5  ;;  %1186 = vmatpush.bf16.xpose.msra.mxu2 %v391_v5  ;;  %306 = vst.msk [vmem:[#allocation4 + $0x20] sm:$0xff] %vm301_vm1, %v1385_v30 }
  0x2b   : > { %307 = vst.msk [vmem:[#allocation4 + $0x28] sm:$0xff] %vm301_vm1, %v1385_v30 }
  0x2c   : > { %308 = vst.msk [vmem:[#allocation4 + $0x30] sm:$0xff] %vm301_vm1, %v1385_v30 }
  0x2d   : > { %309 = vst.msk [vmem:[#allocation4 + $0x38] sm:$0xff] %vm301_vm1, %v1385_v30 }
  0x32   : > { %406 = vmatpush.bf16.xpose.msra.mxu0 %v388_v7  ;;  %1187 = vmatpush.bf16.xpose.msra.mxu2 %v388_v7  ;;  %v1179_v7 = vld [vmem:[%s276_s9] sm:$0xff] }
  0x33   : > { %1191 = vmatpush.bf16.msra.mxu3 %v1179_v7  ;;  %717 = vmatpush.bf16.msra.mxu1 %v1179_v7 }
  0x39   : > { %1139 = vmatmul.msk.bf16.vlgmr.msra.gmra.mxu0 %vm374_vm0, %v1171_v8  ;;  %1141 = vmatmul.msk.bf16.vlgmr.msra.gmra.mxu2 %vm374_vm0, %v1173_v9 }
  0x49   : > { %1140 = vmatmul.msk.bf16.gmra.mxu0 %vm374_vm0, %v1172_v10  ;;  %1142 = vmatmul.msk.bf16.gmra.mxu2 %vm374_vm0, %v1174_v11 }
  0xb6   : > { %v1483_v12 = vpop.f32.mrf.mxu0 }
  0xb7   : > { %v437_v13 = vsel %vm301_vm1, %v1483_v12, -inf }
  0xb8   : > { %438 = vmax.xlane.f32.xlu0 %v437_v13 }
  0xbc   : > { %v1492_v15 = vpop.f32.mrf.mxu2 }
  0xbd   : > { %v449_v16 = vsel %vm301_vm1, %v1492_v15, -inf }
  0xbe   : > { %450 = vmax.xlane.f32.xlu1 %v449_v16  ;;  %v1498_v17 = vpop.f32.mrf.mxu0 }
  0xbf   : > { %v440_v19 = vsel %vm301_vm1, %v1498_v17, -inf }
  0xc4   : > { %v1501_v18 = vpop.f32.mrf.mxu2 }
  0xc5   : > { %v452_v24 = vsel %vm301_vm1, %v1501_v18, -inf }
  0xc6   : > { %441 = vmax.xlane.f32.xlu1 %v440_v19  ;;  %v1505_v20 = vpop.f32.mrf.mxu0 }
  0xc7   : > { %v443_v21 = vsel %vm301_vm1, %v1505_v20, -inf }
  0xc8   : > { %444 = vmax.xlane.f32.xlu0 %v443_v21 }
  0xcc   : > { %v1509_v22 = vpop.f32.mrf.mxu2 }
  0xcd   : > { %v455_v23 = vsel %vm301_vm1, %v1509_v22, -inf }
  0xce   : > { %456 = vmax.xlane.f32.xlu2 %v455_v23  ;;  %453 = vmax.xlane.f32.xlu1 %v452_v24  ;;  %v1515_v25 = vpop.f32.mrf.mxu0 }
  0xcf   : > { %v446_v26 = vsel %vm301_vm1, %v1515_v25, -inf }
  0xd0   : > { %447 = vmax.xlane.f32.xlu0 %v446_v26 }
  0xd4   : > { %v1519_v27 = vpop.f32.mrf.mxu2 }
  0xd5   : > { %v458_v28 = vsel %vm301_vm1, %v1519_v27, -inf }
  0xd6   : > { %459 = vmax.xlane.f32.xlu2 %v458_v28 }
 0x12b   : > { %v439_v32 = vpop.xlane.xlu0 %438 }
 0x12c   : > { %v461_v33 = vmax.f32 %v428_v31, %v439_v32 }
 0x12e   : > { %755 = vst.msk [vmem:[#allocation2] sm:$0xff] %vm284_vm2, %v461_v33  ;;  %v469_v62 = vsub.f32 %v428_v31, %v461_v33 }
 0x130   : > { %v477_v63 = vmul.f32 1.442695, %v469_v62 }
 0x131   : > { %v451_v35 = vpop.xlane.xlu1 %450 }
 0x132   : > { %v1543_v36 = vmax.f32 %v1540_v34, %v451_v35  ;;  %1255 = vpow2.f32 %v477_v63 }
 0x134   : > { %v473_v37 = vsub.f32 %v1540_v34, %v1543_v36  ;;  %759 = vst.msk [vmem:[#allocation2 + $0x20] sm:$0xff] %vm284_vm2, %v1543_v36  ;;  %515 = vperm.xlu1 %1254, %v1543_v36  }
 0x136   : > { %v485_v4 = vmul.f32 1.442695, %v473_v37 }
 0x138   : > { %v1610_v0 = vpop.eup %1255 }
 0x139   : > { %v442_v39 = vpop.xlane.xlu1 %441 }
 0x13a   : > { %v1555_v41 = vmax.f32 %v1550_v38, %v442_v39 }
 0x13b   : > { %v445_v42 = vpop.xlane.xlu0 %444 }
 0x13c   : > { %v470_v43 = vsub.f32 %v1550_v38, %v1555_v41  ;;  %756 = vst.msk [vmem:[#allocation2 + $0x8] sm:$0xff] %vm284_vm2, %v1555_v41  ;;  %v1562_v44 = vmax.f32 %v1552_v40, %v445_v42 }
 0x13e   : > { %v471_v45 = vsub.f32 %v1552_v40, %v1562_v44  ;;  %757 = vst.msk [vmem:[#allocation2 + $0x10] sm:$0xff] %vm284_vm2, %v1562_v44  ;;  %505 = vperm.xlu2 %1252, %v1562_v44   ;;  %v479_v34 = vmul.f32 1.442695, %v470_v43 }
 0x141   : > { %v457_v48 = vpop.xlane.xlu2 %456  ;;  %v454_v49 = vpop.xlane.xlu1 %453 }
 0x142   : > { %v1576_v51 = vmax.f32 %v1569_v46, %v457_v48  ;;  %v1579_v52 = vmax.f32 %v1571_v47, %v454_v49 }
 0x143   : > { %v448_v53 = vpop.xlane.xlu0 %447 }
 0x144   : > { %v475_v54 = vsub.f32 %v1569_v46, %v1576_v51  ;;  %761 = vst.msk [vmem:[#allocation2 + $0x30] sm:$0xff] %vm284_vm2, %v1576_v51  ;;  %v474_v55 = vsub.f32 %v1571_v47, %v1579_v52  ;;  %v1588_v56 = vmax.f32 %v1573_v50, %v448_v53 }
 0x145   : > { %760 = vst.msk [vmem:[#allocation2 + $0x28] sm:$0xff] %vm284_vm2, %v1579_v52 }
 0x146   : > { %v472_v57 = vsub.f32 %v1573_v50, %v1588_v56  ;;  %758 = vst.msk [vmem:[#allocation2 + $0x18] sm:$0xff] %vm284_vm2, %v1588_v56  ;;  %520 = vperm.xlu2 %1252, %v1579_v52   ;;  %510 = vperm.xlu0 %1253, %v1588_v56   ;;  %v489_v50 = vmul.f32 1.442695, %v475_v54  ;;  %v481_v54 = vmul.f32 1.442695, %v471_v45  ;;  %v557_v52 = vld [vmem:[#allocation3] sm:$0xff] }
 0x147   : > { %v487_v36 = vmul.f32 1.442695, %v474_v55 }
 0x148   : > { %v483_v42 = vmul.f32 1.442695, %v472_v57 }
 0x149   : > { %v460_v59 = vpop.xlane.xlu2 %459 }
 0x14a   : > { %v1601_v60 = vmax.f32 %v1598_v58, %v460_v59 }
 0x14c   : > { %v476_v61 = vsub.f32 %v1598_v58, %v1601_v60  ;;  %762 = vst.msk [vmem:[#allocation2 + $0x38] sm:$0xff] %vm284_vm2, %v1601_v60  ;;  %530 = vperm.xlu1 %1254, %v1601_v60  }
 0x14e   : > { %525 = vperm.xlu2 %1252, %v1576_v51   ;;  %v491_v44 = vmul.f32 1.442695, %v476_v61  ;;  %v562_v61 = vld [vmem:[#allocation3 + $0x28] sm:$0xff] }
 0x154   : > { %500 = vperm.xlu1 %1254, %v1555_v41   ;;  %v559_v41 = vld [vmem:[#allocation3 + $0x10] sm:$0xff] }
 0x156   : > { %495 = vperm.xlu2 %1252, %v461_v33  }
 0x15c   : > { %624 = vperm.xlu1 %1254, %v1610_v0  }
 0x198   : > { %v506_v2 = vpop.permute.xlu2 %505 }
 0x199   : > { %v535_v8 = vsub.f32 %v1505_v20, %v506_v2 }
 0x19b   : > { %v545_v10 = vmul.f32 1.442695, %v535_v8 }
 0x1a0   : > { %v521_v5 = vpop.permute.xlu2 %520 }
 0x1a1   : > { %v538_v6 = vsub.f32 %v1501_v18, %v521_v5 }
 0x1a3   : > { %v551_v9 = vmul.f32 1.442695, %v538_v6 }
 0x1a5   : > { %1257 = vpow2.f32 %v551_v9 }
 0x1a6   : > { %1259 = vpow2.f32 %v545_v10  ;;  %v516_v16 = vpop.permute.xlu1 %515 }
 0x1a7   : > { %v537_v18 = vsub.f32 %v1492_v15, %v516_v16 }
 0x1a8   : > { %v526_v11 = vpop.permute.xlu2 %525 }
 0x1a9   : > { %v549_v26 = vmul.f32 1.442695, %v537_v18 }
 0x1ab   : > { %v1258_v13 = vpop.eup %1257 }
 0x1ac   : > { %v588_v14 = vsel %vm301_vm1, %v1258_v13, 0.0  ;;  %v1260_v21 = vpop.eup %1259 }
 0x1ad   : > { %589 = vadd.xlane.f32.xlu1 %v588_v14  ;;  %v579_v20 = vsel %vm301_vm1, %v1260_v21, 0.0 }
 0x1b0   : > { %v496_v19 = vpop.permute.xlu2 %495 }
 0x1b1   : > { %v533_v23 = vsub.f32 %v1483_v12, %v496_v19  ;;  %v561_v19 = vld [vmem:[#allocation3 + $0x20] sm:$0xff] }
 0x1b3   : > { %v541_v24 = vmul.f32 1.442695, %v533_v23 }
 0x1b5   : > { %1261 = vpow2.f32 %v541_v24  ;;  %580 = vadd.xlane.f32.xlu1 %v579_v20 }
 0x1b6   : > { %1263 = vpow2.f32 %v549_v26 }
 0x1b8   : > { %v511_v28 = vpop.permute.xlu0 %510 }
 0x1b9   : > { %v536_v29 = vsub.f32 %v1515_v25, %v511_v28 }
 0x1bb   : > { %v1262_v30 = vpop.eup %1261  ;;  %v547_v31 = vmul.f32 1.442695, %v536_v29  ;;  %v564_v29 = vld [vmem:[#allocation3 + $0x38] sm:$0xff] }
 0x1bc   : > { %v573_v32 = vsel %vm301_vm1, %v1262_v30, 0.0  ;;  %v1264_v15 = vpop.eup %1263 }
 0x1bd   : > { %1265 = vpow2.f32 %v547_v31  ;;  %574 = vadd.xlane.f32.xlu0 %v573_v32  ;;  %v585_v25 = vsel %vm301_vm1, %v1264_v15, 0.0  ;;  %v672_v46 = vpack.c.bf16 %v1258_v13, %v1264_v15 }
 0x1be   : > { %v531_v33 = vpop.permute.xlu1 %530 }
 0x1bf   : > { %v540_v12 = vsub.f32 %v1519_v27, %v531_v33  ;;  %v539_v27 = vsub.f32 %v1509_v22, %v526_v11  ;;  %v565_v11 = vmul.f32 %v1610_v0, %v557_v52 }
 0x1c1   : > { %v555_v35 = vmul.f32 1.442695, %v540_v12  ;;  %v553_v63 = vmul.f32 1.442695, %v539_v27 }
 0x1c3   : > { %v1266_v39 = vpop.eup %1265  ;;  %1267 = vpow2.f32 %v555_v35 }
 0x1c4   : > { %v671_v48 = vpack.c.bf16 %v1266_v39, %v1260_v21  ;;  %1269 = vpow2.f32 %v483_v42  ;;  %v582_v6 = vsel %vm301_vm1, %v1266_v39, 0.0 }
 0x1c5   : > { %586 = vadd.xlane.f32.xlu0 %v585_v25 }
 0x1c6   : > { %v501_v49 = vpop.permute.xlu1 %500  ;;  %1160 = vmatmul.msk.bf16.vlgmr.msra.gmra.mxu3 %vm301_vm1, %v671_v48 }
 0x1c7   : > { %v534_v53 = vsub.f32 %v1498_v17, %v501_v49 }
 0x1c9   : > { %v1268_v59 = vpop.eup %1267  ;;  %v543_v62 = vmul.f32 1.442695, %v534_v53 }
 0x1ca   : > { %v594_v56 = vsel %vm301_vm1, %v1268_v59, 0.0  ;;  %v1637_v57 = vpop.eup %1269 }
 0x1cb   : > { %1271 = vpow2.f32 %v543_v62 }
 0x1cc   : > { %1273 = vpow2.f32 %v489_v50 }
 0x1cd   : > { %595 = vadd.xlane.f32.xlu0 %v594_v56  ;;  %1275 = vpow2.f32 %v553_v63 }
 0x1ce   : > { %639 = vperm.xlu1 %1254, %v1637_v57   ;;  %1277 = vpow2.f32 %v481_v54  ;;  %v1667_v60 = vpop.permute.xlu1 %624 }
 0x1cf   : > { %1279 = vpow2.f32 %v485_v4 }
 0x1d0   : > { %1281 = vpow2.f32 %v491_v44 }
 0x1d1   : > { %v1272_v1 = vpop.eup %1271  ;;  %1283 = vpow2.f32 %v479_v34 }
 0x1d2   : > { %v576_v17 = vsel %vm301_vm1, %v1272_v1, 0.0  ;;  %v670_v22 = vpack.c.bf16 %v1272_v1, %v1262_v30  ;;  %v1642_v51 = vpop.eup %1273  ;;  %1285 = vpow2.f32 %v487_v36 }
 0x1d3   : > { %577 = vadd.xlane.f32.xlu2 %v576_v17  ;;  %v1276_v2 = vpop.eup %1275 }
 0x1d4   : > { %1159 = vmatmul.msk.bf16.vlgmr.msra.gmra.mxu1 %vm301_vm1, %v670_v22  ;;  %v591_v3 = vsel %vm301_vm1, %v1276_v2, 0.0  ;;  %v1278_v5 = vpop.eup %1277  ;;  %v673_v40 = vpack.c.bf16 %v1268_v59, %v1276_v2  ;;  %v558_v59 = vld [vmem:[#allocation3 + $0x8] sm:$0xff] }
 0x1d5   : > { %v1280_v45 = vpop.eup %1279  ;;  %v567_v43 = vmul.f32 %v1278_v5, %v559_v41  ;;  %v614_v41 = vld [vmem:[#allocation4] sm:$0xff] }
 0x1d6   : > { %1161 = vmatmul.msk.bf16.gmra.mxu3 %vm301_vm1, %v672_v46  ;;  %654 = vperm.xlu1 %1254, %v1642_v51   ;;  %v1282_v7 = vpop.eup %1281  ;;  %v569_v23 = vmul.f32 %v1280_v45, %v561_v19 }
 0x1d7   : > { %v1664_v37 = vpop.eup %1283  ;;  %v572_v15 = vmul.f32 %v1282_v7, %v564_v29  ;;  %v560_v29 = vld [vmem:[#allocation3 + $0x18] sm:$0xff] }
 0x1d8   : > { %v1286_v58 = vpop.eup %1285  ;;  %v566_v1 = vmul.f32 %v1664_v37, %v558_v59 }
 0x1d9   : > { %v570_v8 = vmul.f32 %v1286_v58, %v562_v61 }
 0x1db   : > { %592 = vadd.xlane.f32.xlu2 %v591_v3 }
 0x1e1   : > { %634 = vperm.xlu0 %1253, %v1278_v5  }
 0x1e3   : > { %583 = vadd.xlane.f32.xlu2 %v582_v6 }
 0x1e6   : > { %1162 = vmatmul.msk.bf16.gmra.mxu3 %vm301_vm1, %v673_v40 }
 0x1e9   : > { %644 = vperm.xlu0 %1253, %v1280_v45  }
 0x1f1   : > { %659 = vperm.xlu0 %1253, %v1282_v7  }
 0x1fb   : > { %629 = vperm.xlu2 %1252, %v1664_v37   ;;  %v563_v37 = vld [vmem:[#allocation3 + $0x30] sm:$0xff] }
 0x203   : > { %649 = vperm.xlu2 %1252, %v1286_v58  }
 0x220   : > { %v590_v9 = vpop.xlane.xlu1 %589 }
 0x221   : > { %v602_v38 = vadd.f32 %v590_v9, %v570_v8 }
 0x223   : > { %611 = vst.msk [vmem:[#allocation3 + $0x28] sm:$0xff] %vm284_vm2, %v602_v38 }
 0x228   : > { %v581_v10 = vpop.xlane.xlu1 %580 }
 0x229   : > { %v599_v47 = vadd.f32 %v581_v10, %v567_v43  ;;  %v617_v43 = vld [vmem:[#allocation4 + $0x18] sm:$0xff] }
 0x22a   : > { %v1671_v55 = vld [vmem:[#allocation3 + $0x28] sm:$0xff] }
 0x22b   : > { %608 = vst.msk [vmem:[#allocation3 + $0x10] sm:$0xff] %vm284_vm2, %v599_v47  ;;  %1287 = vrcp.f32 %v1671_v55  ;;  %vm857_vm8 = vweird.f32 %v1671_v55  ;;  %v863_v17 = vand.u32 2147483648, %v1671_v55  ;;  %v861_v54 = vand.u32 2147483647, %v1671_v55 }
 0x22c   : > { %v571_v47 = vmul.f32 %v1642_v51, %v563_v37  ;;  %v619_v37 = vld [vmem:[#allocation4 + $0x28] sm:$0xff] }
 0x22d   : > { %v864_v7 = vor.u32 1.1754944e-38, %v863_v17  ;;  %vm862_vm13 = vcmp.eq.f32.partialorder %v861_v54, 8.507059e+37 }
 0x230   : > { %v575_v13 = vpop.xlane.xlu0 %574 }
 0x231   : > { %v597_v14 = vadd.f32 %v575_v13, %v565_v11  ;;  %v1676_v21 = vpop.eup %1287 }
 0x232   : > { %v776_v16 = vld [vmem:[#allocation3 + $0x10] sm:$0xff]  ;;  %v853_v24 = vmul.f32 %v1676_v21, %v1671_v55  ;;  %vm858_vm7 = vweird.f32 %v1676_v21 }
 0x233   : > { %606 = vst.msk [vmem:[#allocation3] sm:$0xff] %vm284_vm2, %v597_v14  ;;  %1289 = vrcp.f32 %v776_v16  ;;  %v821_v32 = vand.u32 2147483648, %v776_v16  ;;  %v819_v12 = vand.u32 2147483647, %v776_v16  ;;  %vm815_vm4 = vweird.f32 %v776_v16  ;;  %vm1692_vm10 = vmor %vm857_vm8, %vm858_vm7 }
 0x234   : > { %v854_v31 = vsub.f32 1.0, %v853_v24  ;;  %v616_v24 = vld [vmem:[#allocation4 + $0x10] sm:$0xff] }
 0x235   : > { %v822_v49 = vor.u32 1.1754944e-38, %v821_v32  ;;  %vm820_vm6 = vcmp.eq.f32.partialorder %v819_v12, 8.507059e+37 }
 0x236   : > { %v855_v42 = vmul.f32 %v1676_v21, %v854_v31 }
 0x238   : > { %v587_v18 = vpop.xlane.xlu0 %586  ;;  %v856_v56 = vadd.f32 %v1676_v21, %v855_v42 }
 0x239   : > { %v1290_v20 = vpop.eup %1289  ;;  %v601_v26 = vadd.f32 %v587_v18, %v569_v23 }
 0x23a   : > { %v811_v28 = vmul.f32 %v1290_v20, %v776_v16  ;;  %v774_v0 = vld [vmem:[#allocation3] sm:$0xff]  ;;  %vm816_vm3 = vweird.f32 %v1290_v20  ;;  %v860_v6 = vsel %vm1692_vm10, %v1676_v21, %v856_v56  ;;  %v662_v16 = vmul.f32 %v1667_v60, %v614_v41  ;;  %v615_v56 = vld [vmem:[#allocation4 + $0x8] sm:$0xff] }
 0x23b   : > { %610 = vst.msk [vmem:[#allocation3 + $0x20] sm:$0xff] %vm284_vm2, %v601_v26  ;;  %1291 = vrcp.f32 %v774_v0  ;;  %vm817_vm5 = vmor %vm815_vm4, %vm816_vm3  ;;  %v793_v22 = vand.u32 2147483648, %v774_v0  ;;  %v791_v3 = vand.u32 2147483647, %v774_v0  ;;  %vm787_vm11 = vweird.f32 %v774_v0 }
 0x23c   : > { %v812_v30 = vsub.f32 1.0, %v811_v28  ;;  %v865_v8 = vsel %vm862_vm13, %v864_v7, %v860_v6 }
 0x23d   : > { %v794_v34 = vor.u32 1.1754944e-38, %v793_v22  ;;  %vm792_vm14 = vcmp.eq.f32.partialorder %v791_v3, 8.507059e+37 }
 0x23e   : > { %v813_v33 = vmul.f32 %v1290_v20, %v812_v30 }
 0x240   : > { %v596_v35 = vpop.xlane.xlu0 %595  ;;  %v814_v39 = vadd.f32 %v1290_v20, %v813_v33  ;;  %v640_v10 = vpop.permute.xlu1 %639  ;;  %v568_v33 = vmul.f32 %v1637_v57, %v560_v29 }
 0x241   : > { %v1292_v25 = vpop.eup %1291  ;;  %v604_v48 = vadd.f32 %v596_v35, %v572_v15  ;;  %v665_v19 = vmul.f32 %v640_v10, %v617_v43 }
 0x242   : > { %v818_v53 = vsel %vm817_vm5, %v1290_v20, %v814_v39  ;;  %v783_v27 = vmul.f32 %v1292_v25, %v774_v0  ;;  %v1682_v62 = vld [vmem:[#allocation3 + $0x20] sm:$0xff]  ;;  %vm788_vm9 = vweird.f32 %v1292_v25 }
 0x243   : > { %613 = vst.msk [vmem:[#allocation3 + $0x38] sm:$0xff] %vm284_vm2, %v604_v48  ;;  %v823_v50 = vsel %vm820_vm6, %v822_v49, %v818_v53  ;;  %1293 = vrcp.f32 %v1682_v62  ;;  %vm789_vm12 = vmor %vm787_vm11, %vm788_vm9  ;;  %v849_v52 = vand.u32 2147483648, %v1682_v62  ;;  %v847_v13 = vand.u32 2147483647, %v1682_v62  ;;  %v618_v49 = vld [vmem:[#allocation4 + $0x20] sm:$0xff] }
 0x244   : > { %906 = vperm.xlu0 %1253, %v823_v50   ;;  %v784_v63 = vsub.f32 1.0, %v783_v27  ;;  %vm843_vm0 = vweird.f32 %v1682_v62 }
 0x245   : > { %v850_v20 = vor.u32 1.1754944e-38, %v849_v52  ;;  %vm848_vm4 = vcmp.eq.f32.partialorder %v847_v13, 8.507059e+37 }
 0x246   : > { %v578_v46 = vpop.xlane.xlu2 %577  ;;  %v785_v2 = vmul.f32 %v1292_v25, %v784_v63 }
 0x247   : > { %v598_v4 = vadd.f32 %v578_v46, %v566_v1 }
 0x248   : > { %v786_v40 = vadd.f32 %v1292_v25, %v785_v2 }
 0x249   : > { %v1294_v44 = vpop.eup %1293  ;;  %607 = vst.msk [vmem:[#allocation3 + $0x8] sm:$0xff] %vm284_vm2, %v598_v4  ;;  %v724_v45 = vpop.f32.mrf.mxu3 }
 0x24a   : > { %v790_v36 = vsel %vm789_vm12, %v1292_v25, %v786_v40  ;;  %v839_v58 = vmul.f32 %v1294_v44, %v1682_v62  ;;  %v1701_v61 = vld [vmem:[#allocation3 + $0x38] sm:$0xff]  ;;  %vm844_vm15 = vweird.f32 %v1294_v44 }
 0x24b   : > { %v795_v9 = vsel %vm792_vm14, %v794_v34, %v790_v36  ;;  %1295 = vrcp.f32 %v1701_v61  ;;  %vm845_vm3 = vmor %vm843_vm0, %vm844_vm15  ;;  %v891_v36 = vand.u32 2147483648, %v1701_v61  ;;  %vm885_vm9 = vweird.f32 %v1701_v61 }
 0x24c   : > { %921 = vperm.xlu0 %1253, %v865_v8   ;;  %896 = vperm.xlu2 %1252, %v795_v9   ;;  %v840_v38 = vsub.f32 1.0, %v839_v58  ;;  %v889_v58 = vand.u32 2147483647, %v1701_v61  ;;  %v620_v8 = vld [vmem:[#allocation4 + $0x30] sm:$0xff]  ;;  %v655_v9 = vpop.permute.xlu1 %654 }
 0x24d   : > { %v892_v52 = vor.u32 1.1754944e-38, %v891_v36 }
 0x24e   : > { %v593_v55 = vpop.xlane.xlu2 %592  ;;  %v841_v11 = vmul.f32 %v1294_v44, %v840_v38  ;;  %vm890_vm11 = vcmp.eq.f32.partialorder %v889_v58, 8.507059e+37 }
 0x24f   : > { %v603_v14 = vadd.f32 %v593_v55, %v571_v47  ;;  %v668_v55 = vmul.f32 %v655_v9, %v620_v8 }
 0x250   : > { %v842_v21 = vadd.f32 %v1294_v44, %v841_v11  ;;  %v775_v23 = vld [vmem:[#allocation3 + $0x8] sm:$0xff] }
 0x251   : > { %612 = vst.msk [vmem:[#allocation3 + $0x30] sm:$0xff] %vm284_vm2, %v603_v14  ;;  %v719_v51 = vpop.f32.mrf.mxu1  ;;  %v726_v18 = vpop.f32.mrf.mxu3  ;;  %1297 = vrcp.f32 %v775_v23  ;;  %v807_v57 = vand.u32 2147483648, %v775_v23  ;;  %v805_v1 = vand.u32 2147483647, %v775_v23  ;;  %vm801_vm6 = vweird.f32 %v775_v23 }
 0x252   : > { %v739_v26 = vadd.f32 %v719_v51, %v662_v16  ;;  %v742_v28 = vadd.f32 %v726_v18, %v665_v19  ;;  %v846_v0 = vsel %vm845_vm3, %v1294_v44, %v842_v21  ;;  %v1710_v30 = vpop.eup %1295 }
 0x253   : > { %v635_v60 = vpop.permute.xlu0 %634  ;;  %v851_v31 = vsel %vm848_vm4, %v850_v20, %v846_v0  ;;  %v881_v35 = vmul.f32 %v1710_v30, %v1701_v61  ;;  %v808_v3 = vor.u32 1.1754944e-38, %v807_v57  ;;  %vm806_vm7 = vcmp.eq.f32.partialorder %v805_v1, 8.507059e+37 }
 0x254   : > { %747 = vst.msk [vmem:[#allocation4] sm:$0xff] %vm301_vm1, %v739_v26  ;;  %v664_v32 = vmul.f32 %v635_v60, %v616_v24  ;;  %916 = vperm.xlu1 %1254, %v851_v31   ;;  %vm886_vm8 = vweird.f32 %v1710_v30  ;;  %v621_v24 = vld [vmem:[#allocation4 + $0x38] sm:$0xff] }
 0x255   : > { %750 = vst.msk [vmem:[#allocation4 + $0x18] sm:$0xff] %vm301_vm1, %v742_v28  ;;  %v882_v59 = vsub.f32 1.0, %v881_v35  ;;  %vm887_vm10 = vmor %vm885_vm9, %vm886_vm8 }
 0x256   : > { %v741_v12 = vadd.f32 %v724_v45, %v664_v32  ;;  %v584_v15 = vpop.xlane.xlu2 %583 }
 0x257   : > { %v1298_v39 = vpop.eup %1297  ;;  %v600_v42 = vadd.f32 %v584_v15, %v568_v33  ;;  %v883_v54 = vmul.f32 %v1710_v30, %v882_v59 }
 0x258   : > { %749 = vst.msk [vmem:[#allocation4 + $0x10] sm:$0xff] %vm301_vm1, %v741_v12  ;;  %v797_v25 = vmul.f32 %v1298_v39, %v775_v23  ;;  %v1719_v27 = vld [vmem:[#allocation3 + $0x30] sm:$0xff]  ;;  %vm802_vm5 = vweird.f32 %v1298_v39 }
 0x259   : > { %609 = vst.msk [vmem:[#allocation3 + $0x18] sm:$0xff] %vm284_vm2, %v600_v42  ;;  %v729_v48 = vpop.f32.mrf.mxu3  ;;  %1299 = vrcp.f32 %v1719_v27  ;;  %vm803_vm2 = vmor %vm801_vm6, %vm802_vm5  ;;  %v721_v4 = vpop.f32.mrf.mxu1  ;;  %v884_v7 = vadd.f32 %v1710_v30, %v883_v54  ;;  %v877_v12 = vand.u32 2147483648, %v1719_v27  ;;  %vm871_vm3 = vweird.f32 %v1719_v27 }
 0x25a   : > { %v798_v53 = vsub.f32 1.0, %v797_v25  ;;  %v875_v15 = vand.u32 2147483647, %v1719_v27  ;;  %vm950_vm6 = vcmask 519168  }
 0x25b   : > { %v645_v62 = vpop.permute.xlu0 %644  ;;  %v888_v41 = vsel %vm887_vm10, %v1710_v30, %v884_v7  ;;  %v766_v25 = vld [vmem:[#allocation4] sm:$0xff] }
 0x25c   : > { %v666_v50 = vmul.f32 %v645_v62, %v618_v49  ;;  %v799_v63 = vmul.f32 %v1298_v39, %v798_v53  ;;  %v893_v16 = vsel %vm890_vm11, %v892_v52, %v888_v41  ;;  %vm876_vm5 = vcmp.eq.f32.partialorder %v875_v15, 8.507059e+37 }
 0x25e   : > { %v743_v17 = vadd.f32 %v729_v48, %v666_v50  ;;  %v630_v22 = vpop.permute.xlu2 %629  ;;  %v800_v46 = vadd.f32 %v1298_v39, %v799_v63 }
 0x25f   : > { %v663_v2 = vmul.f32 %v630_v22, %v615_v56  ;;  %v1300_v34 = vpop.eup %1299  ;;  %v768_v59 = vld [vmem:[#allocation4 + $0x10] sm:$0xff] }
 0x260   : > { %751 = vst.msk [vmem:[#allocation4 + $0x20] sm:$0xff] %vm301_vm1, %v743_v17  ;;  %v804_v5 = vsel %vm803_vm2, %v1298_v39, %v800_v46  ;;  %v777_v6 = vld [vmem:[#allocation3 + $0x18] sm:$0xff]  ;;  %v867_v43 = vmul.f32 %v1300_v34, %v1719_v27  ;;  %vm872_vm0 = vweird.f32 %v1300_v34  ;;  %v878_v39 = vor.u32 1.1754944e-38, %v877_v12 }
 0x261   : > { %v740_v40 = vadd.f32 %v721_v4, %v663_v2  ;;  %v731_v44 = vpop.f32.mrf.mxu3  ;;  %v809_v45 = vsel %vm806_vm7, %v808_v3, %v804_v5  ;;  %1301 = vrcp.f32 %v777_v6  ;;  %v835_v23 = vand.u32 2147483648, %v777_v6  ;;  %vm873_vm4 = vmor %vm871_vm3, %vm872_vm0  ;;  %v769_v2 = vld [vmem:[#allocation4 + $0x18] sm:$0xff] }
 0x262   : > { %901 = vperm.xlu1 %1254, %v809_v45   ;;  %v868_v21 = vsub.f32 1.0, %v867_v43  ;;  %v833_v18 = vand.u32 2147483647, %v777_v6  ;;  %vm829_vm13 = vweird.f32 %v777_v6 }
 0x263   : > { %748 = vst.msk [vmem:[#allocation4 + $0x8] sm:$0xff] %vm301_vm1, %v740_v40  ;;  %v660_v20 = vpop.permute.xlu0 %659  ;;  %v836_v0 = vor.u32 1.1754944e-38, %v835_v23 }
 0x264   : > { %v869_v28 = vmul.f32 %v1300_v34, %v868_v21  ;;  %v669_v29 = vmul.f32 %v660_v20, %v621_v24  ;;  %vm834_vm15 = vcmp.eq.f32.partialorder %v833_v18, 8.507059e+37 }
 0x266   : > { %v650_v38 = vpop.permute.xlu2 %649  ;;  %v870_v33 = vadd.f32 %v1300_v34, %v869_v28 }
 0x267   : > { %v1302_v10 = vpop.eup %1301  ;;  %v667_v47 = vmul.f32 %v650_v38, %v619_v37  ;;  %v770_v17 = vld [vmem:[#allocation4 + $0x20] sm:$0xff] }
 0x268   : > { %v825_v11 = vmul.f32 %v1302_v10, %v777_v6  ;;  %vm830_vm12 = vweird.f32 %v1302_v10  ;;  %v874_v35 = vsel %vm873_vm4, %v1300_v34, %v870_v33 }
 0x269   : > { %v744_v13 = vadd.f32 %v731_v44, %v667_v47  ;;  %v734_v14 = vpop.f32.mrf.mxu3  ;;  %vm831_vm14 = vmor %vm829_vm13, %vm830_vm12  ;;  %v879_v42 = vsel %vm876_vm5, %v878_v39, %v874_v35 }
 0x26a   : > { %v745_v19 = vadd.f32 %v734_v14, %v668_v55  ;;  %931 = vperm.xlu1 %1254, %v893_v16   ;;  %v826_v61 = vsub.f32 1.0, %v825_v11  ;;  %v767_v6 = vld [vmem:[#allocation4 + $0x8] sm:$0xff] }
 0x26b   : > { %752 = vst.msk [vmem:[#allocation4 + $0x28] sm:$0xff] %vm301_vm1, %v744_v13 }
 0x26c   : > { %753 = vst.msk [vmem:[#allocation4 + $0x30] sm:$0xff] %vm301_vm1, %v745_v19  ;;  %v827_v51 = vmul.f32 %v1302_v10, %v826_v61 }
 0x26e   : > { %v828_v26 = vadd.f32 %v1302_v10, %v827_v51 }
 0x270   : > { %v832_v30 = vsel %vm831_vm14, %v1302_v10, %v828_v26 }
 0x271   : > { %v736_v60 = vpop.f32.mrf.mxu3  ;;  %v837_v31 = vsel %vm834_vm15, %v836_v0, %v832_v30 }
 0x272   : > { %v746_v32 = vadd.f32 %v736_v60, %v669_v29  ;;  %911 = vperm.xlu2 %1252, %v837_v31   ;;  %v771_v50 = vld [vmem:[#allocation4 + $0x28] sm:$0xff] }
 0x273   : > { %v772_v44 = vld [vmem:[#allocation4 + $0x30] sm:$0xff] }
 0x274   : > { %754 = vst.msk [vmem:[#allocation4 + $0x38] sm:$0xff] %vm301_vm1, %v746_v32 }
 0x27a   : > { %926 = vperm.xlu2 %1252, %v879_v42  }
 0x27b   : > { %v773_v58 = vld [vmem:[#allocation4 + $0x38] sm:$0xff] }
 0x2a6   : > { %v897_v48 = vpop.permute.xlu2 %896 }
 0x2a7   : > { %v934_v49 = vmul.f32 %v897_v48, %v766_v25 }
 0x2a9   : > { %v942_v53 = vpack.c.bf16 %v934_v49, %v934_v49 }
 0x2ab   : > { %951 = vst.msk [vmem:[%s1741_s18] sm:$0xf] %vm950_vm6, %v942_v53 }
 0x2b6   : > { %v907_v27 = vpop.permute.xlu0 %906 }
 0x2b7   : > { %v936_v62 = vmul.f32 %v907_v27, %v768_v59 }
 0x2b9   : > { %v944_v57 = vpack.c.bf16 %v936_v62, %v936_v62 }
 0x2bb   : > { %953 = vst.msk [vmem:[%s1741_s18 + $0x8] sm:$0xf] %vm950_vm6, %v944_v57 }
 0x2be   : > { %v922_v56 = vpop.permute.xlu0 %921 }
 0x2bf   : > { %v939_v63 = vmul.f32 %v922_v56, %v771_v50 }
 0x2c1   : > { %v947_v1 = vpack.c.bf16 %v939_v63, %v939_v63 }
 0x2c3   : > { %956 = vst.msk [vmem:[%s1741_s18 + $0x14] sm:$0xf] %vm950_vm6, %v947_v1 }
 0x2c6   : > { %v917_v22 = vpop.permute.xlu1 %916 }
 0x2c7   : > { %v938_v46 = vmul.f32 %v917_v22, %v770_v17 }
 0x2c9   : > { %v946_v54 = vpack.c.bf16 %v938_v46, %v938_v46 }
 0x2cb   : > { %955 = vst.msk [vmem:[%s1741_s18 + $0x10] sm:$0xf] %vm950_vm6, %v946_v54 }
 0x2cc   : > { %v912_v3 = vpop.permute.xlu2 %911 }
 0x2cd   : > { %v937_v4 = vmul.f32 %v912_v3, %v769_v2 }
 0x2cf   : > { %v945_v5 = vpack.c.bf16 %v937_v4, %v937_v4 }
 0x2d1   : > { %954 = vst.msk [vmem:[%s1741_s18 + $0xc] sm:$0xf] %vm950_vm6, %v945_v5 }
 0x2d4   : > { %v902_v40 = vpop.permute.xlu1 %901  ;;  %v927_v45 = vpop.permute.xlu2 %926 }
 0x2d5   : > { %v935_v7 = vmul.f32 %v902_v40, %v767_v6  ;;  %v940_v34 = vmul.f32 %v927_v45, %v772_v44 }
 0x2d7   : > { %v943_v36 = vpack.c.bf16 %v935_v7, %v935_v7  ;;  %v948_v37 = vpack.c.bf16 %v940_v34, %v940_v34 }
 0x2d9   : > { %952 = vst.msk [vmem:[%s1741_s18 + $0x4] sm:$0xf] %vm950_vm6, %v943_v36 }
 0x2da   : > { %957 = vst.msk [vmem:[%s1741_s18 + $0x18] sm:$0xf] %vm950_vm6, %v948_v37 }
 0x2dc   : > { %v932_v8 = vpop.permute.xlu1 %931 }
 0x2dd   : > { %v941_v9 = vmul.f32 %v932_v8, %v773_v58 }
 0x2df   : > { %v949_v38 = vpack.c.bf16 %v941_v9, %v941_v9 }
 0x2e1   : > { %958 = vst.msk [vmem:[%s1741_s18 + $0x1c] sm:$0xf] %vm950_vm6, %v949_v38 }
 0x2e2   : > { %1330 = shalt.err (!%p1327_p5)
}
 0x2e3   : > { %s1386_s9 = smov 64   ;;  %s1387_s10 = smov 4  }
 0x2e4   : > { %1192 = dma.vmem_to_hbm [thread:$0]  (%p1448_p4), %s975_s27, 512, %s977_s28, %s960_s15, %s1386_s9, %s1386_s9, %s1387_s10  }
 0x2e5 PF: > { %p1198_p6 = scmp.ge.s32.totalorder %s1381_s17, 2  ;;  %s991_s11 = sand.u32 1, %s1361_s12  }
 0x2e6   : > { %s992_s18 = scalar_lea.sflag [#allocation6], %s991_s11 }
 0x2e7   : > { %p1195_p7 = pnand %p1198_p6, %p1455_p8 }
 0x2e9   : > { %p1196_p9 = pneg %p1195_p7 }
 0x2eb   : > { %1356 = dma.done.wait (%p1196_p9), %s992_s18, 512  }
 0x2ec   : > { %1358 = vsyncadd (%p1196_p9), %s992_s18, 4294966784  ;;  %s16_s17 = sadd.s32 1, %s1381_s17   ;;  %s1806_s12 = smov %s1365_s13 }
 0x2ed   : > { %p13_p10 = scmp.ge.s32.totalorder %s16_s17, 4   ;;  %s1807_s13 = smov %s1369_s14 }
 0x2ee   : > { %s1808_s14 = smov %s1461_s25  ;;  %s1809_s15 = smov %s1377_s16 }
 0x2ef   : > { %s1810_s16 = smov %s1812_s20  ;;  %15 = sbr.rel (!%p13_p10) target bundleno = 4 (0x4), region = 81 }
 0x2f4   :  { %998 = vsyncpa [#allocation6], 1 }
 0x2f5   :  { %1000 = vsyncpa [#allocation6 + $0x1], 1 }

</bundles_post_ra>
